<compile_context>
chip_gen: v7x
topology: tpu7x:2x2x1
jax: 0.10.0
libtpu: 0.0.40
codegen_flags: <defaults>
</compile_context>

<pallas_src>
import functools

import jax
import jax.numpy as jnp
import numpy as np
from jax import lax
from jax.experimental import pallas as pl
from jax.experimental.pallas import tpu as pltpu

EPS = 1e-5


def _round_up(x, m):
    return (x + m - 1) // m * m


# --------------------------------------------------------------------------------------
# Phase 1: conv-as-matmul + per-output-channel sum / sum-of-squares accumulation.
# --------------------------------------------------------------------------------------
def conv_stats_kernel(patches_ref, w_ref, y_ref, sum_ref, sq_ref):
    # patches_ref: (TILE_M, CKKp) bf16   w_ref: (CKKp, COp) bf16
    # y_ref: (TILE_M, COp) f32           sum_ref/sq_ref: (1, COp) f32 accumulators
    i = pl.program_id(0)

    @pl.when(i == 0)
    def _():
        sum_ref[...] = jnp.zeros_like(sum_ref)
        sq_ref[...] = jnp.zeros_like(sq_ref)

    y = jnp.dot(patches_ref[...], w_ref[...], preferred_element_type=jnp.float32)
    y_ref[...] = y
    sum_ref[...] += jnp.sum(y, axis=0, keepdims=True)
    sq_ref[...] += jnp.sum(y * y, axis=0, keepdims=True)


# --------------------------------------------------------------------------------------
# Phase 2: folded BatchNorm affine (y * scale + shift) + ReLU.
# --------------------------------------------------------------------------------------
def bn_relu_kernel(y_ref, scale_ref, shift_ref, o_ref):
    y = y_ref[...]
    o_ref[...] = jnp.maximum(y * scale_ref[...] + shift_ref[...], 0.0).astype(o_ref.dtype)


def im2col_nhwc(x, kernel_size, stride, padding, dilation):
    """x: (N, C, H, W) -> patches (N*Ho*Wo, K*K*C) with columns ordered (kh, kw, ci)."""
    n, c, h, w = x.shape
    k = kernel_size
    x_nhwc = jnp.transpose(x, (0, 2, 3, 1))
    x_pad = jnp.pad(x_nhwc, ((0, 0), (padding, padding), (padding, padding), (0, 0)))
    hp = h + 2 * padding
    wp = w + 2 * padding
    ho = (hp - dilation * (k - 1) - 1) // stride + 1
    wo = (wp - dilation * (k - 1) - 1) // stride + 1
    cols = []
    for kh in range(k):
        for kw in range(k):
            sl = x_pad[:,
                       kh * dilation: kh * dilation + (ho - 1) * stride + 1: stride,
                       kw * dilation: kw * dilation + (wo - 1) * stride + 1: stride,
                       :]                                    # (N, Ho, Wo, C)
            cols.append(sl)
    patches = jnp.concatenate(cols, axis=-1)                 # (N, Ho, Wo, K*K*C)
    patches = patches.reshape(n * ho * wo, k * k * c)
    return patches, ho, wo


@functools.partial(
    jax.jit,
    static_argnames=("kernel_size", "stride", "padding", "dilation", "tile_m"))
def basic_conv(x, weight, gamma, beta, *,
               kernel_size, stride, padding, dilation, tile_m=512):
    """x: (N, C_in, H, W).  weight: (C_out, C_in, K, K).  Returns NCHW float32."""
    n, c_in, h, w = x.shape
    c_out = weight.shape[0]
    k = kernel_size

    patches, ho, wo = im2col_nhwc(x, kernel_size, stride, padding, dilation)
    m, ckk = patches.shape

    # Lane/MXU-friendly padding.  Zero rows/cols are exact no-ops for the matmul
    # and for the BN sums (we divide by the true row count m below).
    co_p = _round_up(c_out, 128)
    ckk_p = _round_up(ckk, 128)
    m_p = _round_up(m, tile_m)
    num_tiles = m_p // tile_m

    patches_p = jnp.pad(patches, ((0, m_p - m), (0, ckk_p - ckk))).astype(jnp.bfloat16)
    w_mat = jnp.transpose(weight, (2, 3, 1, 0)).reshape(k * k * c_in, c_out)   # (kh,kw,ci) rows
    w_p = jnp.pad(w_mat, ((0, ckk_p - ckk), (0, co_p - c_out))).astype(jnp.bfloat16)
    gamma_p = jnp.pad(gamma.reshape(1, c_out).astype(jnp.float32), ((0, 0), (0, co_p - c_out)))
    beta_p = jnp.pad(beta.reshape(1, c_out).astype(jnp.float32), ((0, 0), (0, co_p - c_out)))

    # ---- Phase 1: matmul + batch statistics (reduction over the M grid axis). ----
    y, s, sq = pl.pallas_call(
        conv_stats_kernel,
        out_shape=(jax.ShapeDtypeStruct((m_p, co_p), jnp.float32),
                   jax.ShapeDtypeStruct((1, co_p), jnp.float32),
                   jax.ShapeDtypeStruct((1, co_p), jnp.float32)),
        grid=(num_tiles,),
        in_specs=[
            pl.BlockSpec((tile_m, ckk_p), lambda i: (i, 0)),
            pl.BlockSpec((ckk_p, co_p), lambda i: (0, 0)),
        ],
        out_specs=(
            pl.BlockSpec((tile_m, co_p), lambda i: (i, 0)),
            pl.BlockSpec((1, co_p), lambda i: (0, 0)),
            pl.BlockSpec((1, co_p), lambda i: (0, 0)),
        ),
        compiler_params=pltpu.CompilerParams(
            dimension_semantics=("arbitrary",)),   # stats accumulator => sequential
        cost_estimate=pl.CostEstimate(
            flops=2 * m_p * ckk_p * co_p,
            transcendentals=0,
            bytes_accessed=(m_p * ckk_p * 2 + ckk_p * co_p * 2
                            + m_p * co_p * 4 + 2 * co_p * 4)),
    )(patches_p, w_p)

    # ---- Tiny per-channel math (1, co_p): fold BN into scale/shift (f32). ----
    count = jnp.float32(m)                       # true number of rows = N*Ho*Wo
    mean = s / count
    var = jnp.maximum(sq / count - mean * mean, 0.0)   # biased variance (training mode)
    scale = gamma_p * lax.rsqrt(var + EPS)
    shift = beta_p - mean * scale

    # ---- Phase 2: affine + ReLU, parallel over M tiles. ----
    out_flat = pl.pallas_call(
        bn_relu_kernel,
        out_shape=jax.ShapeDtypeStruct((m_p, co_p), jnp.float32),
        grid=(num_tiles,),
        in_specs=[
            pl.BlockSpec((tile_m, co_p), lambda i: (i, 0)),
            pl.BlockSpec((1, co_p), lambda i: (0, 0)),
            pl.BlockSpec((1, co_p), lambda i: (0, 0)),
        ],
        out_specs=pl.BlockSpec((tile_m, co_p), lambda i: (i, 0)),
        compiler_params=pltpu.CompilerParams(
            dimension_semantics=("parallel",)),
        cost_estimate=pl.CostEstimate(
            flops=3 * m_p * co_p,
            transcendentals=0,
            bytes_accessed=2 * m_p * co_p * 4 + 2 * co_p * 4),
    )(y, scale, shift)

    # (N*Ho*Wo, C_out) -> (N, Ho, Wo, C_out) -> NCHW  (PyTorch parity).
    out = out_flat[:m, :c_out].reshape(n, ho, wo, c_out).transpose(0, 3, 1, 2)
    return out


def reference(x, weight, gamma, beta, *, stride, padding, dilation):
    y = lax.conv_general_dilated(
        x, weight, window_strides=(stride, stride),
        padding=[(padding, padding), (padding, padding)],
        rhs_dilation=(dilation, dilation),
        dimension_numbers=("NCHW", "OIHW", "NCHW"),
        precision=lax.Precision.HIGHEST)
    mean = jnp.mean(y, axis=(0, 2, 3), keepdims=True)
    var = jnp.mean((y - mean) ** 2, axis=(0, 2, 3), keepdims=True)
    y = (y - mean) * lax.rsqrt(var + EPS)
    y = y * gamma.reshape(1, -1, 1, 1) + beta.reshape(1, -1, 1, 1)
    return jnp.maximum(y, 0.0)


if __name__ == "__main__":
    # BasicConv(in_planes=4, out_planes=8, kernel_size=3, stride=1, padding=1)
    N, C_IN, H, W = 2, 4, 16, 16
    C_OUT, K, STRIDE, PAD, DIL = 8, 3, 1, 1, 1

    key = jax.random.PRNGKey(0)
    kx, kw_ = jax.random.split(key)
    x = jax.random.normal(kx, (N, C_IN, H, W), dtype=jnp.float32)
    fan_in = C_IN * K * K
    bound = 1.0 / np.sqrt(fan_in)
    weight = jax.random.uniform(kw_, (C_OUT, C_IN, K, K), dtype=jnp.float32,
                                minval=-bound, maxval=bound)
    # BatchNorm2d affine params (PyTorch default init: weight=1, bias=0).
    gamma = jnp.ones((C_OUT,), dtype=jnp.float32)
    beta = jnp.zeros((C_OUT,), dtype=jnp.float32)

    # tile_m=128 so the toy shape (M = 2*16*16 = 512) exercises a 4-step grid and
    # the cross-tile BN accumulation path; use 512-1024 for real shapes.
    out = basic_conv(x, weight, gamma, beta,
                     kernel_size=K, stride=STRIDE, padding=PAD, dilation=DIL,
                     tile_m=128)
    out = jax.block_until_ready(out)

    # Tight check: reference driven by the same bf16-rounded conv inputs the MXU sees.
    xq = x.astype(jnp.bfloat16).astype(jnp.float32)
    wq = weight.astype(jnp.bfloat16).astype(jnp.float32)
    ref_q = reference(xq, wq, gamma, beta, stride=STRIDE, padding=PAD, dilation=DIL)
    np.testing.assert_allclose(np.asarray(out), np.asarray(ref_q), atol=1e-3, rtol=1e-3)

    # Loose check vs the full-f32 reference (difference = deliberate bf16 MXU inputs).
    ref = reference(x, weight, gamma, beta, stride=STRIDE, padding=PAD, dilation=DIL)
    np.testing.assert_allclose(np.asarray(out), np.asarray(ref), atol=5e-2, rtol=5e-2)

    print("KERNEL_OK")
</pallas_src>

<mosaic_0001>
module attributes {stable_mosaic.version = 11 : i64} {
  func.func @conv_stats_kernel(%arg0: i32, %arg1: memref<128x128xbf16, #tpu.memory_space<vmem>>, %arg2: memref<128x128xbf16, #tpu.memory_space<vmem>>, %arg3: memref<128x128xf32, #tpu.memory_space<vmem>>, %arg4: memref<1x128xf32, #tpu.memory_space<vmem>>, %arg5: memref<1x128xf32, #tpu.memory_space<vmem>>) attributes {dimension_semantics = [#tpu.dimension_semantics<arbitrary>], iteration_bounds = array<i64: 4>, scalar_prefetch = 0 : i64, scratch_operands = 0 : i64, tpu.core_type = #tpu.core_type<tc>, window_params = [{transform_indices = @transform_0, window_bounds = array<i64: 128, 128>}, {pipeline_mode = #tpu.pipeline_mode<synchronous>, transform_indices = @transform_1, window_bounds = array<i64: 128, 128>}, {transform_indices = @transform_2, window_bounds = array<i64: 128, 128>}, {pipeline_mode = #tpu.pipeline_mode<synchronous>, transform_indices = @transform_3, window_bounds = array<i64: 1, 128>}, {pipeline_mode = #tpu.pipeline_mode<synchronous>, transform_indices = @transform_4, window_bounds = array<i64: 1, 128>}]} {
    %c0_i32 = arith.constant 0 : i32
    %0 = arith.cmpi eq, %arg0, %c0_i32 : i32
    %1 = arith.extui %0 : i1 to i32
    %c0_i32_0 = arith.constant 0 : i32
    %2 = arith.cmpi ne, %1, %c0_i32_0 : i32
    scf.if %2 {
      %cst_16 = arith.constant 0.000000e+00 : f32
      %18 = vector.broadcast %cst_16 : f32 to vector<1x128xf32>
      %c0_17 = arith.constant 0 : index
      %c0_18 = arith.constant 0 : index
      %19 = vector.load %arg4[%c0_17, %c0_18] : memref<1x128xf32, #tpu.memory_space<vmem>>, vector<1x128xf32>
      tpu.vector_store %arg4[%c0_17, %c0_18], %18 {strides = array<i32>} : memref<1x128xf32, #tpu.memory_space<vmem>>, vector<1x128xf32>,
      %cst_19 = arith.constant 0.000000e+00 : f32
      %20 = vector.broadcast %cst_19 : f32 to vector<1x128xf32>
      %c0_20 = arith.constant 0 : index
      %c0_21 = arith.constant 0 : index
      %21 = vector.load %arg5[%c0_20, %c0_21] : memref<1x128xf32, #tpu.memory_space<vmem>>, vector<1x128xf32>
      tpu.vector_store %arg5[%c0_20, %c0_21], %20 {strides = array<i32>} : memref<1x128xf32, #tpu.memory_space<vmem>>, vector<1x128xf32>,
    } else {
    }
    %c0 = arith.constant 0 : index
    %c0_1 = arith.constant 0 : index
    %3 = vector.load %arg1[%c0, %c0_1] : memref<128x128xbf16, #tpu.memory_space<vmem>>, vector<128x128xbf16>
    %c0_2 = arith.constant 0 : index
    %c0_3 = arith.constant 0 : index
    %4 = vector.load %arg2[%c0_2, %c0_3] : memref<128x128xbf16, #tpu.memory_space<vmem>>, vector<128x128xbf16>
    %cst = arith.constant dense<0.000000e+00> : vector<128x128xf32>
    %5 = tpu.matmul %3, %4, %cst {dimension_numbers = #tpu.dot_dimension_numbers<[1], [0], [0], [1], [0, 0, 1, 1], [], []>} : vector<128x128xbf16>, vector<128x128xbf16>, vector<128x128xf32> -> vector<128x128xf32>
    %c0_4 = arith.constant 0 : index
    %c0_5 = arith.constant 0 : index
    %6 = vector.load %arg3[%c0_4, %c0_5] : memref<128x128xf32, #tpu.memory_space<vmem>>, vector<128x128xf32>
    tpu.vector_store %arg3[%c0_4, %c0_5], %5 {strides = array<i32>} : memref<128x128xf32, #tpu.memory_space<vmem>>, vector<128x128xf32>,
    %c0_6 = arith.constant 0 : index
    %c0_7 = arith.constant 0 : index
    %7 = vector.load %arg4[%c0_6, %c0_7] : memref<1x128xf32, #tpu.memory_space<vmem>>, vector<1x128xf32>
    %cst_8 = arith.constant dense<0.000000e+00> : vector<128xf32>
    %8 = vector.multi_reduction <add>, %5, %cst_8 [0] : vector<128x128xf32> to vector<128xf32>
    %9 = vector.shape_cast %8 : vector<128xf32> to vector<1x128xf32>
    %10 = arith.addf %7, %9 : vector<1x128xf32>
    %c0_9 = arith.constant 0 : index
    %c0_10 = arith.constant 0 : index
    %11 = vector.load %arg4[%c0_9, %c0_10] : memref<1x128xf32, #tpu.memory_space<vmem>>, vector<1x128xf32>
    tpu.vector_store %arg4[%c0_9, %c0_10], %10 {strides = array<i32>} : memref<1x128xf32, #tpu.memory_space<vmem>>, vector<1x128xf32>,
    %c0_11 = arith.constant 0 : index
    %c0_12 = arith.constant 0 : index
    %12 = vector.load %arg5[%c0_11, %c0_12] : memref<1x128xf32, #tpu.memory_space<vmem>>, vector<1x128xf32>
    %13 = arith.mulf %5, %5 : vector<128x128xf32>
    %cst_13 = arith.constant dense<0.000000e+00> : vector<128xf32>
    %14 = vector.multi_reduction <add>, %13, %cst_13 [0] : vector<128x128xf32> to vector<128xf32>
    %15 = vector.shape_cast %14 : vector<128xf32> to vector<1x128xf32>
    %16 = arith.addf %12, %15 : vector<1x128xf32>
    %c0_14 = arith.constant 0 : index
    %c0_15 = arith.constant 0 : index
    %17 = vector.load %arg5[%c0_14, %c0_15] : memref<1x128xf32, #tpu.memory_space<vmem>>, vector<1x128xf32>
    tpu.vector_store %arg5[%c0_14, %c0_15], %16 {strides = array<i32>} : memref<1x128xf32, #tpu.memory_space<vmem>>, vector<1x128xf32>,
    return
  }
  func.func @transform_0(%arg0: i32) -> (i32, i32) {
    %c0_i32 = arith.constant 0 : i32
    %c0_i32_0 = arith.constant 0 : i32
    return %arg0, %c0_i32 : i32, i32
  }
  func.func @transform_1(%arg0: i32) -> (i32, i32) {
    %c0_i32 = arith.constant 0 : i32
    %c0_i32_0 = arith.constant 0 : i32
    %c0_i32_1 = arith.constant 0 : i32
    return %c0_i32, %c0_i32_0 : i32, i32
  }
  func.func @transform_2(%arg0: i32) -> (i32, i32) {
    %c0_i32 = arith.constant 0 : i32
    %c0_i32_0 = arith.constant 0 : i32
    return %arg0, %c0_i32 : i32, i32
  }
  func.func @transform_3(%arg0: i32) -> (i32, i32) {
    %c0_i32 = arith.constant 0 : i32
    %c0_i32_0 = arith.constant 0 : i32
    %c0_i32_1 = arith.constant 0 : i32
    return %c0_i32, %c0_i32_0 : i32, i32
  }
  func.func @transform_4(%arg0: i32) -> (i32, i32) {
    %c0_i32 = arith.constant 0 : i32
    %c0_i32_0 = arith.constant 0 : i32
    %c0_i32_1 = arith.constant 0 : i32
    return %c0_i32, %c0_i32_0 : i32, i32
  }
}

module attributes {stable_mosaic.version = 11 : i64} {
  func.func @bn_relu_kernel(%arg0: i32, %arg1: memref<128x128xf32, #tpu.memory_space<vmem>>, %arg2: memref<1x128xf32, #tpu.memory_space<vmem>>, %arg3: memref<1x128xf32, #tpu.memory_space<vmem>>, %arg4: memref<128x128xf32, #tpu.memory_space<vmem>>) attributes {dimension_semantics = [#tpu.dimension_semantics<parallel>], iteration_bounds = array<i64: 4>, scalar_prefetch = 0 : i64, scratch_operands = 0 : i64, tpu.core_type = #tpu.core_type<tc>, window_params = [{transform_indices = @transform_0, window_bounds = array<i64: 128, 128>}, {pipeline_mode = #tpu.pipeline_mode<synchronous>, transform_indices = @transform_1, window_bounds = array<i64: 1, 128>}, {pipeline_mode = #tpu.pipeline_mode<synchronous>, transform_indices = @transform_2, window_bounds = array<i64: 1, 128>}, {transform_indices = @transform_3, window_bounds = array<i64: 128, 128>}]} {
    %c0 = arith.constant 0 : index
    %c0_0 = arith.constant 0 : index
    %0 = vector.load %arg1[%c0, %c0_0] : memref<128x128xf32, #tpu.memory_space<vmem>>, vector<128x128xf32>
    %c0_1 = arith.constant 0 : index
    %c0_2 = arith.constant 0 : index
    %1 = vector.load %arg2[%c0_1, %c0_2] : memref<1x128xf32, #tpu.memory_space<vmem>>, vector<1x128xf32>
    %2 = vector.broadcast %1 : vector<1x128xf32> to vector<128x128xf32>
    %3 = arith.mulf %0, %2 : vector<128x128xf32>
    %c0_3 = arith.constant 0 : index
    %c0_4 = arith.constant 0 : index
    %4 = vector.load %arg3[%c0_3, %c0_4] : memref<1x128xf32, #tpu.memory_space<vmem>>, vector<1x128xf32>
    %5 = vector.broadcast %4 : vector<1x128xf32> to vector<128x128xf32>
    %6 = arith.addf %3, %5 : vector<128x128xf32>
    %cst = arith.constant 0.000000e+00 : f32
    %7 = vector.broadcast %cst : f32 to vector<128x128xf32>
    %8 = arith.maximumf %6, %7 : vector<128x128xf32>
    %c0_5 = arith.constant 0 : index
    %c0_6 = arith.constant 0 : index
    %9 = vector.load %arg4[%c0_5, %c0_6] : memref<128x128xf32, #tpu.memory_space<vmem>>, vector<128x128xf32>
    tpu.vector_store %arg4[%c0_5, %c0_6], %8 {strides = array<i32>} : memref<128x128xf32, #tpu.memory_space<vmem>>, vector<128x128xf32>,
    return
  }
  func.func @transform_0(%arg0: i32) -> (i32, i32) {
    %c0_i32 = arith.constant 0 : i32
    %c0_i32_0 = arith.constant 0 : i32
    return %arg0, %c0_i32 : i32, i32
  }
  func.func @transform_1(%arg0: i32) -> (i32, i32) {
    %c0_i32 = arith.constant 0 : i32
    %c0_i32_0 = arith.constant 0 : i32
    %c0_i32_1 = arith.constant 0 : i32
    return %c0_i32, %c0_i32_0 : i32, i32
  }
  func.func @transform_2(%arg0: i32) -> (i32, i32) {
    %c0_i32 = arith.constant 0 : i32
    %c0_i32_0 = arith.constant 0 : i32
    %c0_i32_1 = arith.constant 0 : i32
    return %c0_i32, %c0_i32_0 : i32, i32
  }
  func.func @transform_3(%arg0: i32) -> (i32, i32) {
    %c0_i32 = arith.constant 0 : i32
    %c0_i32_0 = arith.constant 0 : i32
    return %arg0, %c0_i32 : i32, i32
  }
}

</mosaic_0001>

<bundles_post_ra>
// kernel: basic_conv.2
= control target key start
LH: loop header
LB: loop body
LE: loop exit
PB: predicated region body
PF: predicated region fallthrough
CT: control target
= control target key end

     0   :  { %s727_s15 = smov 0   ;;  %s814_s0 = inlined_call_operand.vmem [shape: bf16[512,128], index: 0, kind: input, shape index: {}]   ;;  %s815_s1 = inlined_call_operand.vmem [shape: bf16[128,128], index: 1, kind: input, shape index: {}]   ;;  %s816_s2 = inlined_call_operand.vmem [shape: f32[512,128], index: 2, kind: output, shape index: {0}]   ;;  %s817_s3 = inlined_call_operand.vmem [shape: f32[1,128], index: 3, kind: output, shape index: {1}]   ;;  %s818_s4 = inlined_call_operand.vmem [shape: f32[1,128], index: 4, kind: output, shape index: {2}]  }
   0x1 LB: > { %s576_s16 = sadd.s32 4294967295, %s699_s15   ;;  %p580_p0 = scmp.ge.s32.totalorder %s699_s15, 1  ;;  %s699_s15 = sphi %s727_s15, %s15_s15  }
   0x2   : > { %p158_p1 = scmp.lt.s32.totalorder %s699_s15, 5 }
   0x4   : > { %p159_p2 = pnand %p580_p0, %p158_p1 }
   0x5   : > { %s581_s17 = sshll.u32 (!%p159_p2), %s576_s16, 4  ;;  %p585_p4 = scmp.ne.s32.totalorder (!%p159_p2), %s576_s16, 0 }
   0x6   : > { %162 = sbr.rel (%p159_p2) target bundleno = 315 (0x13b), region = 28  ;;  %p185_p3 = scmp.lt.s32.totalorder (!%p159_p2), %s581_s17, 63 }
   0xd   : > { %s820_s17 = smov (!%p185_p3, %s581_s17), 63  ;;  %200 = sbr.rel (%p585_p4) target bundleno = 20 (0x14), region = 32 }
   0xe   : > { %s582_s18 = sshll.u32 %s820_s17, 2  ;;  %s584_s19 = sshll.u32 %s820_s17, 3  ;;  %v701_v0 = vmov (!%p585_p4), 0.0  }
   0xf   : > { %s738_s22 = scalar_lea.vmem %s814_s0, %s582_s18  ;;  %s743_s25 = scalar_lea.vmem %s816_s2, %s584_s19  ;;  %201 = vst [vmem:[%s817_s3] sm:$0x1] (!%p585_p4), %v701_v0  ;;  %202 = vst [vmem:[%s818_s4] sm:$0x1] (!%p585_p4), %v701_v0 }
  0x14 PF: > { %v677_v1 = vld [vmem:[%s815_s1] sm:$0xff]   ;;  %v678_v2 = vld [vmem:[%s815_s1 + $0x8] sm:$0xff]   ;;  %v679_v3 = vld [vmem:[%s815_s1 + $0x10] sm:$0xff]  }
  0x15   : > { %620 = vmatprep.subr.bf16.mxu0 %v677_v1  ;;  %652 = vmatprep.subr.bf16.mxu1 %v677_v1  ;;  %v680_v4 = vld [vmem:[%s815_s1 + $0x18] sm:$0xff]   ;;  %v685_v5 = vld [vmem:[%s738_s22] sm:$0xff]   ;;  %v682_v8 = vld [vmem:[%s815_s1 + $0x28] sm:$0xff]  }
  0x16   : > { %621 = vmatpush3.bf16.msra.mxu0 %v677_v1  ;;  %660 = vmatpush3.bf16.msra.mxu1 %v677_v1  ;;  %v681_v6 = vld [vmem:[%s815_s1 + $0x20] sm:$0xff]   ;;  %v683_v9 = vld [vmem:[%s815_s1 + $0x30] sm:$0xff]   ;;  %v684_v10 = vld [vmem:[%s815_s1 + $0x38] sm:$0xff]  }
  0x17   : > { %622 = vmatprep.subr.bf16.mxu0 %v678_v2  ;;  %653 = vmatprep.subr.bf16.mxu1 %v678_v2  ;;  %v689_v7 = vld [vmem:[%s738_s22 + $0x20] sm:$0xff]   ;;  %v686_v11 = vld [vmem:[%s738_s22 + $0x8] sm:$0xff]   ;;  %v687_v13 = vld [vmem:[%s738_s22 + $0x10] sm:$0xff]  }
  0x18   : > { %636 = vmatprep.mubr.bf16.mxu0 %v685_v5  ;;  %644 = vmatprep.mubr.bf16.mxu1 %v689_v7  ;;  %v690_v12 = vld [vmem:[%s738_s22 + $0x28] sm:$0xff]   ;;  %v691_v14 = vld [vmem:[%s738_s22 + $0x30] sm:$0xff]   ;;  %v688_v15 = vld [vmem:[%s738_s22 + $0x18] sm:$0xff]  }
  0x19   : > { %v692_v16 = vld [vmem:[%s738_s22 + $0x38] sm:$0xff]  }
  0x1a   : > { %623 = vmatpush3.bf16.msra.mxu0 %v678_v2  ;;  %661 = vmatpush3.bf16.msra.mxu1 %v678_v2 }
  0x1b   : > { %624 = vmatprep.subr.bf16.mxu0 %v679_v3  ;;  %654 = vmatprep.subr.bf16.mxu1 %v679_v3 }
  0x1e   : > { %625 = vmatpush3.bf16.msra.mxu0 %v679_v3  ;;  %662 = vmatpush3.bf16.msra.mxu1 %v679_v3 }
  0x1f   : > { %626 = vmatprep.subr.bf16.mxu0 %v680_v4  ;;  %655 = vmatprep.subr.bf16.mxu1 %v680_v4 }
  0x22   : > { %627 = vmatpush3.bf16.msra.mxu0 %v680_v4  ;;  %663 = vmatpush3.bf16.msra.mxu1 %v680_v4 }
  0x23   : > { %628 = vmatprep.subr.bf16.mxu0 %v681_v6  ;;  %656 = vmatprep.subr.bf16.mxu1 %v681_v6 }
  0x26   : > { %629 = vmatpush3.bf16.msra.mxu0 %v681_v6  ;;  %664 = vmatpush3.bf16.msra.mxu1 %v681_v6 }
  0x27   : > { %630 = vmatprep.subr.bf16.mxu0 %v682_v8  ;;  %657 = vmatprep.subr.bf16.mxu1 %v682_v8 }
  0x2a   : > { %631 = vmatpush3.bf16.msra.mxu0 %v682_v8  ;;  %665 = vmatpush3.bf16.msra.mxu1 %v682_v8 }
  0x2b   : > { %632 = vmatprep.subr.bf16.mxu0 %v683_v9  ;;  %658 = vmatprep.subr.bf16.mxu1 %v683_v9 }
  0x2e   : > { %633 = vmatpush3.bf16.msra.mxu0 %v683_v9  ;;  %666 = vmatpush3.bf16.msra.mxu1 %v683_v9 }
  0x2f   : > { %634 = vmatprep.subr.bf16.mxu0 %v684_v10  ;;  %659 = vmatprep.subr.bf16.mxu1 %v684_v10 }
  0x32   : > { %635 = vmatpush3.bf16.msra.mxu0 %v684_v10  ;;  %667 = vmatpush3.bf16.msra.mxu1 %v684_v10 }
  0x35   : > { %637 = vmatmul.mubr.bf16.vlgmr.msra.gmra.mrb[0].mxu0 %v686_v11  ;;  %645 = vmatmul.mubr.bf16.vlgmr.msra.gmra.mrb[0].mxu1 %v690_v12 }
  0x36   : > { %640 = vmatprep.mubr.bf16.mxu0 %v687_v13  ;;  %648 = vmatprep.mubr.bf16.mxu1 %v691_v14 }
  0x3d   : > { %641 = vmatmul.mubr.bf16.gmra.mrb[4].mxu0 %v688_v15  ;;  %649 = vmatmul.mubr.bf16.gmra.mrb[4].mxu1 %v692_v16 }
 0x108   : > { %v638_v17 = vpop.f32.mrb[0].mxu0  ;;  %v646_v18 = vpop.f32.mrb[0].mxu1 }
 0x109   : > { %430 = vst [vmem:[%s743_s25 + $0x10] sm:$0xff] %v638_v17  ;;  %v365_v19 = vpop.f32.mrb[1].mxu0  ;;  %438 = vst [vmem:[%s743_s25 + $0x50] sm:$0xff] %v646_v18  ;;  %v397_v20 = vpop.f32.mrb[1].mxu1  ;;  %v471_v28 = vmul.f32 %v638_v17, %v638_v17  ;;  %v479_v60 = vmul.f32 %v646_v18, %v646_v18 }
 0x10a   : > { %428 = vst [vmem:[%s743_s25] sm:$0xff] %v365_v19  ;;  %v639_v21 = vpop.f32.mrb[2].mxu0  ;;  %436 = vst [vmem:[%s743_s25 + $0x40] sm:$0xff] %v397_v20  ;;  %v647_v22 = vpop.f32.mrb[2].mxu1  ;;  %v469_v25 = vmul.f32 %v365_v19, %v365_v19  ;;  %v477_v54 = vmul.f32 %v397_v20, %v397_v20 }
 0x10b   : > { %431 = vst [vmem:[%s743_s25 + $0x18] sm:$0xff] %v639_v21  ;;  %v368_v23 = vpop.f32.mrb[3].mxu0  ;;  %439 = vst [vmem:[%s743_s25 + $0x58] sm:$0xff] %v647_v22  ;;  %v400_v24 = vpop.f32.mrb[3].mxu1  ;;  %v472_v31 = vmul.f32 %v639_v21, %v639_v21  ;;  %v480_v63 = vmul.f32 %v647_v22, %v647_v22 }
 0x10c   : > { %429 = vst [vmem:[%s743_s25 + $0x8] sm:$0xff] %v368_v23  ;;  %v445_v26 = vadd.f32 %v368_v23, %v365_v19  ;;  %v470_v27 = vmul.f32 %v368_v23, %v368_v23  ;;  %437 = vst [vmem:[%s743_s25 + $0x48] sm:$0xff] %v400_v24  ;;  %v478_v59 = vmul.f32 %v400_v24, %v400_v24 }
 0x10e   : > { %v446_v29 = vadd.f32 %v638_v17, %v445_v26  ;;  %v485_v30 = vadd.f32 %v470_v27, %v469_v25  ;;  %v468_v27 = vld [vmem:[%s818_s4] sm:$0x1] }
 0x110   : > { %v486_v32 = vadd.f32 %v485_v30, %v471_v28  ;;  %v642_v33 = vpop.f32.mrb[4].mxu0  ;;  %v447_v34 = vadd.f32 %v639_v21, %v446_v29  ;;  %v650_v35 = vpop.f32.mrb[4].mxu1 }
 0x111   : > { %434 = vst [vmem:[%s743_s25 + $0x30] sm:$0xff] %v642_v33  ;;  %v381_v36 = vpop.f32.mrb[5].mxu0  ;;  %442 = vst [vmem:[%s743_s25 + $0x70] sm:$0xff] %v650_v35  ;;  %v413_v37 = vpop.f32.mrb[5].mxu1  ;;  %v475_v48 = vmul.f32 %v642_v33, %v642_v33  ;;  %v483_v8 = vmul.f32 %v650_v35, %v650_v35 }
 0x112   : > { %432 = vst [vmem:[%s743_s25 + $0x20] sm:$0xff] %v381_v36  ;;  %v448_v38 = vadd.f32 %v447_v34, %v381_v36  ;;  %v473_v39 = vmul.f32 %v381_v36, %v381_v36  ;;  %v487_v40 = vadd.f32 %v486_v32, %v472_v31  ;;  %v643_v41 = vpop.f32.mrb[6].mxu0  ;;  %440 = vst [vmem:[%s743_s25 + $0x60] sm:$0xff] %v413_v37  ;;  %v651_v42 = vpop.f32.mrb[6].mxu1 }
 0x113   : > { %435 = vst [vmem:[%s743_s25 + $0x38] sm:$0xff] %v643_v41  ;;  %v384_v43 = vpop.f32.mrb[7].mxu0  ;;  %443 = vst [vmem:[%s743_s25 + $0x78] sm:$0xff] %v651_v42  ;;  %v416_v44 = vpop.f32.mrb[7].mxu1  ;;  %v476_v51 = vmul.f32 %v643_v41, %v643_v41  ;;  %v481_v2 = vmul.f32 %v413_v37, %v413_v37  ;;  %v484_v11 = vmul.f32 %v651_v42, %v651_v42 }
 0x114   : > { %v488_v45 = vadd.f32 %v487_v40, %v473_v39  ;;  %433 = vst [vmem:[%s743_s25 + $0x28] sm:$0xff] %v384_v43  ;;  %v449_v46 = vadd.f32 %v448_v38, %v384_v43  ;;  %v474_v47 = vmul.f32 %v384_v43, %v384_v43  ;;  %441 = vst [vmem:[%s743_s25 + $0x68] sm:$0xff] %v416_v44 }
 0x115   : > { %v482_v7 = vmul.f32 %v416_v44, %v416_v44 }
 0x116   : > { %v450_v49 = vadd.f32 %v642_v33, %v449_v46  ;;  %v489_v50 = vadd.f32 %v488_v45, %v474_v47 }
 0x118   : > { %v490_v52 = vadd.f32 %v489_v50, %v475_v48  ;;  %v451_v53 = vadd.f32 %v643_v41, %v450_v49 }
 0x11a   : > { %v452_v55 = vadd.f32 %v451_v53, %v397_v20  ;;  %v491_v56 = vadd.f32 %v490_v52, %v476_v51 }
 0x11c   : > { %v492_v57 = vadd.f32 %v491_v56, %v477_v54  ;;  %v453_v58 = vadd.f32 %v452_v55, %v400_v24  ;;  %v444_v24 = vld [vmem:[%s817_s3] sm:$0x1] }
 0x11e   : > { %v454_v61 = vadd.f32 %v646_v18, %v453_v58  ;;  %v493_v62 = vadd.f32 %v492_v57, %v478_v59 }
 0x120   : > { %v494_v0 = vadd.f32 %v493_v62, %v479_v60  ;;  %v455_v1 = vadd.f32 %v647_v22, %v454_v61 }
 0x122   : > { %v456_v3 = vadd.f32 %v455_v1, %v413_v37  ;;  %v495_v4 = vadd.f32 %v494_v0, %v480_v63 }
 0x124   : > { %v496_v5 = vadd.f32 %v495_v4, %v481_v2  ;;  %v457_v6 = vadd.f32 %v456_v3, %v416_v44 }
 0x126   : > { %v458_v9 = vadd.f32 %v650_v35, %v457_v6  ;;  %v497_v10 = vadd.f32 %v496_v5, %v482_v7 }
 0x128   : > { %v459_v12 = vadd.f32 %v651_v42, %v458_v9  ;;  %v498_v13 = vadd.f32 %v497_v10, %v483_v8 }
 0x12a   : > { %v460_v14 = vrot.slane %v459_v12, 4  ;;  %v499_v15 = vadd.f32 %v498_v13, %v484_v11 }
 0x12c   : > { %v461_v16 = vadd.f32 %v460_v14, %v459_v12  ;;  %v500_v17 = vrot.slane %v499_v15, 4 }
 0x12e   : > { %v462_v18 = vrot.slane %v461_v16, 2  ;;  %v501_v19 = vadd.f32 %v500_v17, %v499_v15 }
 0x130   : > { %v463_v20 = vadd.f32 %v462_v18, %v461_v16  ;;  %v502_v21 = vrot.slane %v501_v19, 2 }
 0x132   : > { %v464_v22 = vrot.slane %v463_v20, 1  ;;  %v503_v23 = vadd.f32 %v502_v21, %v501_v19 }
 0x134   : > { %v465_v25 = vadd.f32 %v464_v22, %v463_v20  ;;  %v504_v26 = vrot.slane %v503_v23, 1 }
 0x136   : > { %v466_v28 = vadd.f32 %v465_v25, %v444_v24  ;;  %v505_v29 = vadd.f32 %v504_v26, %v503_v23 }
 0x138   : > { %467 = vst [vmem:[%s817_s3] sm:$0x1] %v466_v28  ;;  %v506_v30 = vadd.f32 %v505_v29, %v468_v27 }
 0x13a   : > { %507 = vst [vmem:[%s818_s4] sm:$0x1] %v506_v30 }
 0x13b PF: > { %s15_s15 = sadd.s32 1, %s699_s15  }
 0x13c   : > { %p12_p5 = scmp.ge.s32.totalorder %s15_s15, 6  }
 0x13e   :  { %14 = sbr.rel (!%p12_p5) target bundleno = 1 (0x1), region = 78 }

// kernel: basic_conv.3
= control target key start
LH: loop header
LB: loop body
LE: loop exit
PB: predicated region body
PF: predicated region fallthrough
CT: control target
= control target key end

     0   :  { %s373_s12 = smov 0   ;;  %s468_s0 = inlined_call_operand.vmem [shape: f32[512,128], index: 0, kind: input, shape index: {}]   ;;  %s469_s1 = inlined_call_operand.vmem [shape: f32[1,128], index: 1, kind: input, shape index: {}]   ;;  %s470_s2 = inlined_call_operand.vmem [shape: f32[1,128], index: 2, kind: input, shape index: {}]   ;;  %s471_s3 = inlined_call_operand.vmem [shape: f32[512,128], index: 3, kind: output, shape index: {}]  }
   0x1 LB: > { %s324_s13 = sadd.s32 4294967295, %s351_s12   ;;  %p328_p0 = scmp.ge.s32.totalorder %s351_s12, 1  ;;  %s351_s12 = sphi %s373_s12, %s13_s12  }
   0x2   : > { %p138_p1 = scmp.lt.s32.totalorder %s351_s12, 5 }
   0x4   : > { %p139_p2 = pnand %p328_p0, %p138_p1 }
   0x5   : > { %s329_s14 = sshll.u32 (!%p139_p2), %s324_s13, 4  ;;  %v384_v0 = vld [vmem:[%s469_s1] ss:$0 sm:$0xff] (!%p139_p2) }
   0x6   : > { %142 = sbr.rel (%p139_p2) target bundleno = 34 (0x22), region = 32  ;;  %p163_p3 = scmp.lt.s32.totalorder (!%p139_p2), %s329_s14, 63  ;;  %v394_v1 = vld [vmem:[%s470_s2] ss:$0 sm:$0xff] (!%p139_p2) }
   0xd   : > { %s473_s14 = smov (!%p163_p3, %s329_s14), 63 }
   0xe   : > { %s330_s15 = sshll.u32 %s473_s14, 3 }
   0xf   : > { %s389_s20 = scalar_lea.vmem %s468_s0, %s330_s15  ;;  %s417_s25 = scalar_lea.vmem %s471_s3, %s330_s15 }
  0x10   : > { %v174_v2 = vld [vmem:[%s389_s20] sm:$0xff]  ;;  %v175_v3 = vld [vmem:[%s389_s20 + $0x8] sm:$0xff]  ;;  %v176_v4 = vld [vmem:[%s389_s20 + $0x10] sm:$0xff] }
  0x11   : > { %v197_v5 = vmul.f32 %v384_v0, %v174_v2  ;;  %v198_v6 = vmul.f32 %v384_v0, %v175_v3  ;;  %v199_v7 = vmul.f32 %v384_v0, %v176_v4  ;;  %v177_v8 = vld [vmem:[%s389_s20 + $0x18] sm:$0xff]  ;;  %v178_v9 = vld [vmem:[%s389_s20 + $0x20] sm:$0xff]  ;;  %v179_v10 = vld [vmem:[%s389_s20 + $0x28] sm:$0xff] }
  0x12   : > { %v200_v11 = vmul.f32 %v384_v0, %v177_v8  ;;  %v201_v12 = vmul.f32 %v384_v0, %v178_v9  ;;  %v202_v13 = vmul.f32 %v384_v0, %v179_v10  ;;  %v180_v14 = vld [vmem:[%s389_s20 + $0x30] sm:$0xff]  ;;  %v181_v15 = vld [vmem:[%s389_s20 + $0x38] sm:$0xff]  ;;  %v182_v24 = vld [vmem:[%s389_s20 + $0x40] sm:$0xff] }
  0x13   : > { %v220_v16 = vadd.f32 %v394_v1, %v197_v5  ;;  %v221_v17 = vadd.f32 %v394_v1, %v198_v6  ;;  %v222_v18 = vadd.f32 %v394_v1, %v199_v7  ;;  %v203_v19 = vmul.f32 %v384_v0, %v180_v14  ;;  %v183_v25 = vld [vmem:[%s389_s20 + $0x48] sm:$0xff]  ;;  %v184_v26 = vld [vmem:[%s389_s20 + $0x50] sm:$0xff]  ;;  %v185_v31 = vld [vmem:[%s389_s20 + $0x58] sm:$0xff] }
  0x14   : > { %v223_v20 = vadd.f32 %v394_v1, %v200_v11  ;;  %v224_v21 = vadd.f32 %v394_v1, %v201_v12  ;;  %v225_v22 = vadd.f32 %v394_v1, %v202_v13  ;;  %v204_v23 = vmul.f32 %v384_v0, %v181_v15  ;;  %v186_v32 = vld [vmem:[%s389_s20 + $0x60] sm:$0xff]  ;;  %v187_v33 = vld [vmem:[%s389_s20 + $0x68] sm:$0xff]  ;;  %v188_v38 = vld [vmem:[%s389_s20 + $0x70] sm:$0xff] }
  0x15   : > { %v236_v27 = vmax.f32 %v220_v16, 0.0  ;;  %v237_v28 = vmax.f32 %v221_v17, 0.0  ;;  %v238_v29 = vmax.f32 %v222_v18, 0.0  ;;  %v226_v30 = vadd.f32 %v394_v1, %v203_v19  ;;  %v189_v43 = vld [vmem:[%s389_s20 + $0x78] sm:$0xff] }
  0x16   : > { %v239_v34 = vmax.f32 %v223_v20, 0.0  ;;  %v240_v35 = vmax.f32 %v224_v21, 0.0  ;;  %v241_v36 = vmax.f32 %v225_v22, 0.0  ;;  %v227_v37 = vadd.f32 %v394_v1, %v204_v23 }
  0x17   : > { %252 = vst [vmem:[%s417_s25] sm:$0xff] %v236_v27  ;;  %253 = vst [vmem:[%s417_s25 + $0x8] sm:$0xff] %v237_v28  ;;  %v242_v39 = vmax.f32 %v226_v30, 0.0  ;;  %v205_v40 = vmul.f32 %v384_v0, %v182_v24  ;;  %v206_v41 = vmul.f32 %v384_v0, %v183_v25  ;;  %v207_v42 = vmul.f32 %v384_v0, %v184_v26 }
  0x18   : > { %254 = vst [vmem:[%s417_s25 + $0x10] sm:$0xff] %v238_v29  ;;  %255 = vst [vmem:[%s417_s25 + $0x18] sm:$0xff] %v239_v34  ;;  %v243_v44 = vmax.f32 %v227_v37, 0.0  ;;  %v208_v45 = vmul.f32 %v384_v0, %v185_v31  ;;  %v209_v46 = vmul.f32 %v384_v0, %v186_v32  ;;  %v210_v47 = vmul.f32 %v384_v0, %v187_v33 }
  0x19   : > { %256 = vst [vmem:[%s417_s25 + $0x20] sm:$0xff] %v240_v35  ;;  %257 = vst [vmem:[%s417_s25 + $0x28] sm:$0xff] %v241_v36  ;;  %v228_v48 = vadd.f32 %v394_v1, %v205_v40  ;;  %v229_v49 = vadd.f32 %v394_v1, %v206_v41  ;;  %v230_v50 = vadd.f32 %v394_v1, %v207_v42 }
  0x1a   : > { %258 = vst [vmem:[%s417_s25 + $0x30] sm:$0xff] %v242_v39  ;;  %v211_v51 = vmul.f32 %v384_v0, %v188_v38  ;;  %259 = vst [vmem:[%s417_s25 + $0x38] sm:$0xff] %v243_v44  ;;  %v231_v52 = vadd.f32 %v394_v1, %v208_v45  ;;  %v232_v53 = vadd.f32 %v394_v1, %v209_v46 }
  0x1b   : > { %v233_v54 = vadd.f32 %v394_v1, %v210_v47  ;;  %v212_v55 = vmul.f32 %v384_v0, %v189_v43  ;;  %v244_v56 = vmax.f32 %v228_v48, 0.0  ;;  %v245_v57 = vmax.f32 %v229_v49, 0.0 }
  0x1c   : > { %v246_v58 = vmax.f32 %v230_v50, 0.0  ;;  %v234_v59 = vadd.f32 %v394_v1, %v211_v51  ;;  %v247_v60 = vmax.f32 %v231_v52, 0.0  ;;  %v248_v61 = vmax.f32 %v232_v53, 0.0 }
  0x1d   : > { %v249_v62 = vmax.f32 %v233_v54, 0.0  ;;  %v235_v63 = vadd.f32 %v394_v1, %v212_v55  ;;  %260 = vst [vmem:[%s417_s25 + $0x40] sm:$0xff] %v244_v56  ;;  %261 = vst [vmem:[%s417_s25 + $0x48] sm:$0xff] %v245_v57 }
  0x1e   : > { %262 = vst [vmem:[%s417_s25 + $0x50] sm:$0xff] %v246_v58  ;;  %v250_v2 = vmax.f32 %v234_v59, 0.0  ;;  %263 = vst [vmem:[%s417_s25 + $0x58] sm:$0xff] %v247_v60 }
  0x1f   : > { %264 = vst [vmem:[%s417_s25 + $0x60] sm:$0xff] %v248_v61  ;;  %265 = vst [vmem:[%s417_s25 + $0x68] sm:$0xff] %v249_v62  ;;  %v251_v0 = vmax.f32 %v235_v63, 0.0 }
  0x20   : > { %266 = vst [vmem:[%s417_s25 + $0x70] sm:$0xff] %v250_v2 }
  0x21   : > { %267 = vst [vmem:[%s417_s25 + $0x78] sm:$0xff] %v251_v0 }
  0x22 PF: > { %s13_s12 = sadd.s32 1, %s351_s12  }
  0x23   : > { %p10_p4 = scmp.ge.s32.totalorder %s13_s12, 6  }
  0x25   :  { %12 = sbr.rel (!%p10_p4) target bundleno = 1 (0x1), region = 62 }

</bundles_post_ra>
